<compile_context>
chip_gen: v7x
topology: tpu7x:2x2x1
jax: 0.10.0
libtpu: 0.0.40
codegen_flags: <defaults>
</compile_context>

<pallas_src>
import functools

import jax
import jax.numpy as jnp
from jax.experimental import pallas as pl
from jax.experimental.pallas import tpu as pltpu

_LANE = 128
_NEG_INF = -1e30  # finite "minus infinity" for padded class logits


def _fused_head_softmax_kernel(x_ref, w_ref, b_ref, o_ref, acc_ref):
    """Fused global-avg-pool -> linear -> softmax(dim=1).

    Grid: (batch tiles [parallel], HW tiles [arbitrary reduction]).

    x_ref:   [TB, C, HW_TILE] bf16 storage (upcast to f32 in-kernel)
    w_ref:   [C, KP]          f32, already scaled by 1/(H*W), K padded to KP
    b_ref:   [1, KP]          f32, padded classes carry -1e30
    o_ref:   [TB, KP]         f32 probabilities (padded classes ~ 0)
    acc_ref: [TB, C]          f32 running spatial sum (VMEM scratch)
    """
    j = pl.program_id(1)

    @pl.when(j == 0)
    def _init():
        acc_ref[...] = jnp.zeros_like(acc_ref)

    # Upcast per tile; all reductions accumulate in f32.
    x = x_ref[...].astype(jnp.float32)          # [TB, C, HW_TILE]
    acc_ref[...] += jnp.sum(x, axis=2)          # [TB, C]

    @pl.when(j == pl.num_programs(1) - 1)
    def _finalize():
        # 1/(H*W) already folded into w; bias broadcasts over the batch tile.
        logits = jnp.dot(acc_ref[...], w_ref[...],
                         preferred_element_type=jnp.float32) + b_ref[...]
        # Numerically stable softmax over axis=1 (== torch dim=1). Padded
        # classes have logit -1e30 -> exp == 0, so real-class probs are exact.
        m = jnp.max(logits, axis=1, keepdims=True)
        e = jnp.exp(logits - m)
        denom = jnp.sum(e, axis=1, keepdims=True)
        o_ref[...] = e * pl.reciprocal(denom, approx=True)


def _choose_batch_tile(B):
    # MXU-aligned batch tiles when B allows it (256 fills v6e/v7x MXU rows,
    # 128 fills v5e); otherwise take the whole (small) batch as one block.
    for tb in (256, 128, 64, 32, 16, 8):
        if B % tb == 0:
            return tb
    return B


def _choose_hw_tile(HW, C, TB, bytes_per_elem, per_buffer_budget):
    # HW tile must be a multiple of 128 dividing HW, or the full extent.
    if HW % _LANE != 0:
        return HW
    t = (per_buffer_budget // (max(1, 2 * TB * C * bytes_per_elem))) // _LANE * _LANE
    t = max(_LANE, min(t, HW))
    while HW % t != 0:
        t -= _LANE
    return t


@functools.partial(jax.jit, static_argnames=("batch_tile", "hw_tile"))
def trace_wrapper_forward(x_nchw, w, b, *, batch_tile=None, hw_tile=None):
    """TraceWrapper.forward: probs = softmax(model(x), dim=1).

    model = global-average-pool (NCHW -> NC) followed by linear C -> K.
    x_nchw: [B, C, H, W]; w: [C, K]; b: [K]  ->  probs [B, K] (f32).
    """
    B, C, H, W = x_nchw.shape
    K = w.shape[1]
    HW = H * W
    KP = ((K + _LANE - 1) // _LANE) * _LANE          # lane-dense class dim

    # x dominates HBM traffic -> bf16 storage (f32 accumulation in-kernel).
    x3 = x_nchw.reshape(B, C, HW).astype(jnp.bfloat16)

    # Fold the 1/(H*W) pooling scale into the tiny f32 weight; pad K -> KP.
    w_scaled = w.astype(jnp.float32) / jnp.float32(HW)
    w_pad = jnp.pad(w_scaled, ((0, 0), (0, KP - K)))
    b_pad = jnp.concatenate(
        [b.astype(jnp.float32),
         jnp.full((KP - K,), _NEG_INF, jnp.float32)]).reshape(1, KP)

    TB = batch_tile if batch_tile is not None else _choose_batch_tile(B)
    # Keep the double-buffered x tile well under v7x's 64 MiB physical VMEM.
    HW_TILE = hw_tile if hw_tile is not None else _choose_hw_tile(
        HW, C, TB, bytes_per_elem=2, per_buffer_budget=8 << 20)

    grid = (B // TB, HW // HW_TILE)

    # Explicit VMEM budget (inputs/outputs are double-buffered by BlockSpec).
    x_tile_bytes = TB * C * HW_TILE * 2
    w_bytes = C * KP * 4
    b_bytes = KP * 4
    out_tile_bytes = TB * KP * 4
    acc_bytes = TB * C * 4
    vmem_need = 2 * (x_tile_bytes + w_bytes + b_bytes + out_tile_bytes) + acc_bytes
    vmem_limit = int(max(16 << 20, min(2 * vmem_need + (4 << 20), 48 << 20)))

    cost = pl.CostEstimate(
        flops=2 * B * C * HW + 2 * B * C * KP + 5 * B * KP,
        transcendentals=B * KP,
        bytes_accessed=B * C * HW * 2 + C * KP * 4 + KP * 4 + B * KP * 4,
    )

    probs_padded = pl.pallas_call(
        _fused_head_softmax_kernel,
        out_shape=jax.ShapeDtypeStruct((B, KP), jnp.float32),
        grid_spec=pltpu.PrefetchScalarGridSpec(
            num_scalar_prefetch=0,
            grid=grid,
            in_specs=[
                pl.BlockSpec((TB, C, HW_TILE), lambda i, j: (i, 0, j)),
                pl.BlockSpec((C, KP), lambda i, j: (0, 0)),
                pl.BlockSpec((1, KP), lambda i, j: (0, 0)),
            ],
            out_specs=pl.BlockSpec((TB, KP), lambda i, j: (i, 0)),
            scratch_shapes=[pltpu.VMEM((TB, C), jnp.float32)],
        ),
        compiler_params=pltpu.CompilerParams(
            dimension_semantics=("parallel", "arbitrary"),
            vmem_limit_bytes=vmem_limit,
        ),
        cost_estimate=cost,
    )(x3, w_pad, b_pad)

    return probs_padded[:, :K]


def _reference(x_nchw, w, b):
    B, C, H, W = x_nchw.shape
    # Same bf16 storage quantization of x as the kernel, f32 math.
    x = x_nchw.reshape(B, C, H * W).astype(jnp.bfloat16).astype(jnp.float32)
    pooled = jnp.mean(x, axis=2)
    logits = pooled @ w.astype(jnp.float32) + b.astype(jnp.float32)
    return jax.nn.softmax(logits, axis=1)


if __name__ == "__main__":
    # Small deterministic shapes consistent with an image-classifier wrapper.
    B, C, H, W = 2, 4, 16, 16
    NUM_CLASSES = 8

    key = jax.random.PRNGKey(0)
    kx, kw, kb = jax.random.split(key, 3)
    x = jax.random.normal(kx, (B, C, H, W), dtype=jnp.float32)
    w = jax.random.normal(kw, (C, NUM_CLASSES), dtype=jnp.float32) * 0.1
    b = jax.random.normal(kb, (NUM_CLASSES,), dtype=jnp.float32) * 0.01

    ref = jax.block_until_ready(_reference(x, w, b))

    # 1) default tiling (single reduction step at these tiny shapes)
    probs = jax.block_until_ready(trace_wrapper_forward(x, w, b))
    # 2) force a 2-step HW reduction to exercise the accumulator pipeline
    probs_multi = jax.block_until_ready(
        trace_wrapper_forward(x, w, b, hw_tile=128))

    for p in (probs, probs_multi):
        assert p.shape == (B, NUM_CLASSES)
        # Tolerances cover bf16 x storage + EUP approximate reciprocal.
        assert jnp.allclose(p, ref, atol=2e-3, rtol=2e-3), "mismatch vs reference"
        assert jnp.allclose(jnp.sum(p, axis=1), 1.0, atol=2e-3), "rows must sum to 1"

    print("KERNEL_OK")
</pallas_src>

<mosaic_0001>
module attributes {stable_mosaic.version = 11 : i64} {
  func.func @_fused_head_softmax_kernel(%arg0: i32, %arg1: i32, %arg2: memref<2x4x256xbf16, #tpu.memory_space<vmem>>, %arg3: memref<4x128xf32, #tpu.memory_space<vmem>>, %arg4: memref<1x128xf32, #tpu.memory_space<vmem>>, %arg5: memref<2x128xf32, #tpu.memory_space<vmem>>, %arg6: memref<2x4xf32, #tpu.memory_space<vmem>>) attributes {dimension_semantics = [#tpu.dimension_semantics<parallel>, #tpu.dimension_semantics<arbitrary>], iteration_bounds = array<i64: 1, 1>, scalar_prefetch = 0 : i64, scratch_operands = 1 : i64, tpu.core_type = #tpu.core_type<tc>, window_params = [{transform_indices = @transform_0, window_bounds = array<i64: 2, 4, 256>}, {pipeline_mode = #tpu.pipeline_mode<synchronous>, transform_indices = @transform_1, window_bounds = array<i64: 4, 128>}, {pipeline_mode = #tpu.pipeline_mode<synchronous>, transform_indices = @transform_2, window_bounds = array<i64: 1, 128>}, {transform_indices = @transform_3, window_bounds = array<i64: 2, 128>}]} {
    %c0_i32 = arith.constant 0 : i32
    %0 = arith.cmpi eq, %arg1, %c0_i32 : i32
    %1 = arith.extui %0 : i1 to i32
    %c0_i32_0 = arith.constant 0 : i32
    %2 = arith.cmpi ne, %1, %c0_i32_0 : i32
    scf.if %2 {
      %cst_9 = arith.constant 0.000000e+00 : f32
      %12 = vector.broadcast %cst_9 : f32 to vector<2x4xf32>
      %c0_10 = arith.constant 0 : index
      %c0_11 = arith.constant 0 : index
      %13 = vector.load %arg6[%c0_10, %c0_11] : memref<2x4xf32, #tpu.memory_space<vmem>>, vector<2x4xf32>
      tpu.vector_store %arg6[%c0_10, %c0_11], %12 {strides = array<i32>} : memref<2x4xf32, #tpu.memory_space<vmem>>, vector<2x4xf32>,
    } else {
    }
    %c0 = arith.constant 0 : index
    %c0_1 = arith.constant 0 : index
    %c0_2 = arith.constant 0 : index
    %3 = vector.load %arg2[%c0, %c0_1, %c0_2] : memref<2x4x256xbf16, #tpu.memory_space<vmem>>, vector<2x4x256xbf16>
    %4 = arith.extf %3 : vector<2x4x256xbf16> to vector<2x4x256xf32>
    %c0_3 = arith.constant 0 : index
    %c0_4 = arith.constant 0 : index
    %5 = vector.load %arg6[%c0_3, %c0_4] : memref<2x4xf32, #tpu.memory_space<vmem>>, vector<2x4xf32>
    %cst = arith.constant dense<0.000000e+00> : vector<2x4xf32>
    %6 = vector.multi_reduction <add>, %4, %cst [2] : vector<2x4x256xf32> to vector<2x4xf32>
    %7 = arith.addf %5, %6 : vector<2x4xf32>
    %c0_5 = arith.constant 0 : index
    %c0_6 = arith.constant 0 : index
    %8 = vector.load %arg6[%c0_5, %c0_6] : memref<2x4xf32, #tpu.memory_space<vmem>>, vector<2x4xf32>
    tpu.vector_store %arg6[%c0_5, %c0_6], %7 {strides = array<i32>} : memref<2x4xf32, #tpu.memory_space<vmem>>, vector<2x4xf32>,
    %c0_i32_7 = arith.constant 0 : i32
    %9 = arith.cmpi eq, %arg1, %c0_i32_7 : i32
    %10 = arith.extui %9 : i1 to i32
    %c0_i32_8 = arith.constant 0 : i32
    %11 = arith.cmpi ne, %10, %c0_i32_8 : i32
    scf.if %11 {
      %c0_9 = arith.constant 0 : index
      %c0_10 = arith.constant 0 : index
      %12 = vector.load %arg6[%c0_9, %c0_10] : memref<2x4xf32, #tpu.memory_space<vmem>>, vector<2x4xf32>
      %c0_11 = arith.constant 0 : index
      %c0_12 = arith.constant 0 : index
      %13 = vector.load %arg3[%c0_11, %c0_12] : memref<4x128xf32, #tpu.memory_space<vmem>>, vector<4x128xf32>
      %cst_13 = arith.constant dense<0.000000e+00> : vector<2x128xf32>
      %14 = tpu.matmul %12, %13, %cst_13 {dimension_numbers = #tpu.dot_dimension_numbers<[1], [0], [0], [1], [0, 0, 1, 1], [], []>} : vector<2x4xf32>, vector<4x128xf32>, vector<2x128xf32> -> vector<2x128xf32>
      %c0_14 = arith.constant 0 : index
      %c0_15 = arith.constant 0 : index
      %15 = vector.load %arg4[%c0_14, %c0_15] : memref<1x128xf32, #tpu.memory_space<vmem>>, vector<1x128xf32>
      %16 = vector.broadcast %15 : vector<1x128xf32> to vector<2x128xf32>
      %17 = arith.addf %14, %16 : vector<2x128xf32>
      %cst_16 = arith.constant dense<0xFF800000> : vector<2xf32>
      %18 = vector.multi_reduction <maximumf>, %17, %cst_16 [1] : vector<2x128xf32> to vector<2xf32>
      %19 = vector.shape_cast %18 : vector<2xf32> to vector<2x1xf32>
      %20 = vector.broadcast %19 : vector<2x1xf32> to vector<2x128xf32>
      %21 = arith.subf %17, %20 : vector<2x128xf32>
      %22 = math.exp %21 : vector<2x128xf32>
      %cst_17 = arith.constant dense<0.000000e+00> : vector<2xf32>
      %23 = vector.multi_reduction <add>, %22, %cst_17 [1] : vector<2x128xf32> to vector<2xf32>
      %24 = vector.shape_cast %23 : vector<2xf32> to vector<2x1xf32>
      %25 = tpu.reciprocal %24 {approx = true} : vector<2x1xf32> -> vector<2x1xf32>
      %26 = vector.broadcast %25 : vector<2x1xf32> to vector<2x128xf32>
      %27 = arith.mulf %22, %26 : vector<2x128xf32>
      %c0_18 = arith.constant 0 : index
      %c0_19 = arith.constant 0 : index
      %28 = vector.load %arg5[%c0_18, %c0_19] : memref<2x128xf32, #tpu.memory_space<vmem>>, vector<2x128xf32>
      tpu.vector_store %arg5[%c0_18, %c0_19], %27 {strides = array<i32>} : memref<2x128xf32, #tpu.memory_space<vmem>>, vector<2x128xf32>,
    } else {
    }
    return
  }
  func.func @transform_0(%arg0: i32, %arg1: i32) -> (i32, i32, i32) {
    %c0_i32 = arith.constant 0 : i32
    %c0_i32_0 = arith.constant 0 : i32
    return %arg0, %c0_i32, %arg1 : i32, i32, i32
  }
  func.func @transform_1(%arg0: i32, %arg1: i32) -> (i32, i32) {
    %c0_i32 = arith.constant 0 : i32
    %c0_i32_0 = arith.constant 0 : i32
    %c0_i32_1 = arith.constant 0 : i32
    return %c0_i32, %c0_i32_0 : i32, i32
  }
  func.func @transform_2(%arg0: i32, %arg1: i32) -> (i32, i32) {
    %c0_i32 = arith.constant 0 : i32
    %c0_i32_0 = arith.constant 0 : i32
    %c0_i32_1 = arith.constant 0 : i32
    return %c0_i32, %c0_i32_0 : i32, i32
  }
  func.func @transform_3(%arg0: i32, %arg1: i32) -> (i32, i32) {
    %c0_i32 = arith.constant 0 : i32
    %c0_i32_0 = arith.constant 0 : i32
    return %arg0, %c0_i32 : i32, i32
  }
}

</mosaic_0001>

<bundles_post_ra>
// kernel: trace_wrapper_forward.1
= control target key start
LH: loop header
LB: loop body
LE: loop exit
PB: predicated region body
PF: predicated region fallthrough
CT: control target
= control target key end

     0   :  { %vm32_vm0 = vcmask 1043456   ;;  %s273_s0 = inlined_call_operand.vmem [shape: bf16[2,4,256], index: 0, kind: input, shape index: {}]   ;;  %s274_s1 = inlined_call_operand.vmem [shape: f32[4,128], index: 1, kind: input, shape index: {}]   ;;  %s275_s2 = inlined_call_operand.vmem [shape: f32[1,128], index: 2, kind: input, shape index: {}]   ;;  %s276_s3 = inlined_call_operand.hbm [shape: f32[2,128], index: 3, kind: output, shape index: {}]  }
   0x1   :  { %v181_v0 = vld [vmem:[%s273_s0] sm:$0xff]  }
   0x2   :  { %8 = vsyncpa [#allocation4], 0  ;;  %v182_v1 = vunpack.c.l.bf16 %v181_v0  ;;  %v183_v2 = vunpack.c.h.bf16 %v181_v0  ;;  %vm19_vm1 = vcmask 25600   ;;  %v222_v11 = vmov 0.0   ;;  %v65_v12 = vld [vmem:[%s274_s1] sm:$0xf] }
   0x3   :  { %20 = vst.msk [vmem:[#allocation2] sm:$0x3] %vm19_vm1, %v222_v11  ;;  %186 = vmatprep.subr.mxu0 %v222_v11  ;;  %vm223_vm2 = vmmov 0   ;;  %v45_v13 = vlaneseq  ;;  %vm55_vm3 = vcmask 1041409   ;;  %vm73_vm4 = vcmask 31744   ;;  %s224_s16 = smov [#allocation3]  }
   0x4   :  { %v28_v3 = vcombine.high %v182_v1, %v182_v1  ;;  %v33_v4 = vsel %vm32_vm0, %v182_v1, 0.0  ;;  %v29_v5 = vcombine.high %v183_v2, %v183_v2  ;;  %v38_v7 = vsel %vm32_vm0, %v183_v2, 0.0  ;;  %187 = vmatpush3.msk.msra.mxu0 %vm32_vm0, %v65_v12  ;;  %188 = vmatprep.mubr.msk.f32.mxu0 %vm223_vm2, %v222_v11  ;;  %v177_v25 = vld [vmem:[%s275_s2] ss:$0 sm:$0xff]  ;;  %s169_s17 = sshll.u32 %s224_s16, 4  ;;  %s170_s17 = int_to_ptr.vmem [resolvable:$true] %s169_s17 }
   0x5   :  { %v46_v14 = vand.u32 127, %v45_v13  ;;  %v48_v15 = vshrl.u32 %v45_v13, 7  ;;  %vm150_vm5 = vcmask 1041408   ;;  %s198_s2 = scalar_lea.vmem %s170_s17, 32  ;;  %p203_p1 = scmp.lt.s32.totalorder %s170_s17, %s170_s17 }
   0x6   :  { %v34_v6 = vsel %vm32_vm0, %v28_v3, 0.0  ;;  %v39_v8 = vsel %vm32_vm0, %v29_v5, 0.0  ;;  %p199_p0 = scmp.ne.s32.totalorder %s170_s17, %s198_s2  ;;  %p204_p2 = scmp.lt.s32.totalorder %s198_s2, %s198_s2 }
   0x7   :  { %v35_v9 = vadd.f32 %v34_v6, %v33_v4  ;;  %v40_v10 = vadd.f32 %v39_v8, %v38_v7  ;;  %v49_v17 = vsub.s32 %v46_v14, %v48_v15 }
   0x8   :  { %p205_p3 = por %p204_p2, %p203_p1 }
   0x9   :  { %36 = vadd.xlane.f32.xlu0 %v35_v9 }
   0xa   :  { %v25_v21 = vld [vmem:[#allocation2] sm:$0x3]  ;;  %p206_p4 = pnand %p205_p3, %p199_p0 }
   0xd   :  { %41 = vadd.xlane.f32.xlu0 %v40_v10 }
  0x96   :  { %v37_v16 = vpop.xlane.xlu0 %36 }
  0x97   :  { %v50_v19 = vrot.slane %v37_v16, %v49_v17 }
  0x9a   :  { %v42_v18 = vpop.xlane.xlu0 %41 }
  0x9b   :  { %v54_v20 = vrot.slane %v42_v18, %v49_v17 }
  0x9d   :  { %v56_v22 = vsel %vm55_vm3, %v54_v20, %v50_v19 }
  0x9e   :  { %v58_v23 = vadd.f32 %v56_v22, %v25_v21 }
  0xa0   :  { %60 = vst.msk [vmem:[#allocation2] sm:$0x3] %vm19_vm1, %v58_v23 }
  0xa7   :  { %v64_v24 = vld [vmem:[#allocation2] sm:$0x3] }
  0xa8   :  { %189 = vmatmul.mubr.msk.f32.vlgmr.msra.gmra.mrb[0].mxu0 %vm73_vm4, %v64_v24 }
 0x17b   :  { %v146_v26 = vpop.f32.mrb[0].mxu0 }
 0x17c   :  { %v147_v27 = vadd.f32 %v177_v25, %v146_v26  ;;  %v190_v28 = vpop.f32.mrb[1].mxu0 }
 0x17e   :  { %v151_v29 = vsel %vm150_vm5, %v147_v27, -inf }
 0x17f   :  { %152 = vmax.xlane.f32.xlu1 %v151_v29 }
 0x20c   :  { %v153_v30 = vpop.xlane.xlu1 %152 }
 0x20d   :  { %v154_v31 = vsub.f32 %v147_v27, %v153_v30 }
 0x20f   :  { %v155_v32 = vmul.f32 1.442695, %v154_v31 }
 0x211   :  { %194 = vpow2.f32 %v155_v32 }
 0x21b   :  { %v195_v33 = vpop.eup %194 }
 0x21c   :  { %v157_v34 = vsel %vm150_vm5, %v195_v33, 0.0 }
 0x21d   :  { %158 = vadd.xlane.f32.xlu1 %v157_v34 }
 0x2aa   :  { %v159_v35 = vpop.xlane.xlu1 %158 }
 0x2ab   :  { %196 = vrcp.f32 %v159_v35 }
 0x2b5   :  { %v197_v36 = vpop.eup %196 }
 0x2b6   :  { %v161_v37 = vmul.f32 %v197_v36, %v195_v33 }
 0x2b8   :  { %162 = vst [vmem:[#allocation3] sm:$0x3] %v161_v37 }
 0x2b9   :  { %209 = shalt.err (!%p206_p4)
}
 0x2ba   :  { %s210_s20 = scalar_lea.hbm %s276_s3, 32 }
 0x2bb   :  { %p211_p5 = scmp.ne.s32.totalorder %s276_s3, %s210_s20  ;;  %p214_p6 = scmp.lt.u32.totalorder %s210_s20, %s276_s3 }
 0x2bd   :  { %p216_p7 = pnand %p214_p6, %p211_p5 }
 0x2bf   :  { %219 = shalt.err (!%p216_p7)
}
 0x2c0   :  { %172 = dma.vmem_to_hbm [thread:$0]  %s170_s17, 32, %s276_s3, [#allocation4]  }
 0x2c1   :  { %220 = dma.done.wait [#allocation4], 32  }
 0x2c2   :  { %221 = vsyncadd [#allocation4], 4294967264 }
 0x2c3   :  { %176 = vsyncpa [#allocation4], 1 }

</bundles_post_ra>
